<compile_context>
chip_gen: v5e
topology: v5e:2x2
jax: 0.10.0
libtpu: 0.0.40
codegen_flags: <defaults>
</compile_context>

<pallas_src>
import functools

import jax
import jax.numpy as jnp
from jax.experimental import pallas as pl
from jax.experimental.pallas import tpu as pltpu

IN_FEATURES = 128
OUT_FEATURES = 64
OUT_PADDED = 128          # lane-dense output width (multiple of 128)
NEGATIVE_SLOPE = 0.01
MAX_TILE_B = 512          # batch tile: multiple of 8 (f32 sublane), big enough to
                          # amortize the ~0.35 us/step pipeline overhead


def _round_up(x, m):
    return (x + m - 1) // m * m


def linear_leakyrelu_kernel(x_ref, w_ref, b_ref, o_ref, *, negative_slope):
    # bf16 inputs on the MXU, f32 accumulation.
    acc = jnp.dot(x_ref[...], w_ref[...], preferred_element_type=jnp.float32)
    # Grid-invariant bias block -> single fused VPU broadcast-add (no reshapes
    # inside the body, nothing re-materialized per grid step).
    t1 = acc + b_ref[...]
    # t4 = where(t1 > 0, t1, t1 * negative_slope)  -> LeakyReLU
    o_ref[...] = jnp.where(t1 > 0, t1, t1 * negative_slope).astype(o_ref.dtype)


def linear_leakyrelu(x, weight, bias, negative_slope=NEGATIVE_SLOPE):
    """x: (batch, 128) f32; weight: (64, 128) f32 (PyTorch layout); bias: (64,) f32."""
    batch, in_f = x.shape
    out_f, in_f2 = weight.shape
    assert in_f == in_f2 == IN_FEATURES and out_f == OUT_FEATURES
    assert bias.shape == (out_f,)

    # --- glue (outside the kernel): lane-dense, MXU-friendly layouts ---------
    # W^T as (in, out), zero-padded to 128 output lanes; bias padded likewise.
    w_t = jnp.zeros((in_f, OUT_PADDED), jnp.float32).at[:, :out_f].set(weight.T)
    b2d = jnp.zeros((1, OUT_PADDED), jnp.float32).at[:, :out_f].set(bias)

    # bf16 activations / weights for the MXU; accumulation stays f32 in-kernel.
    x_bf = x.astype(jnp.bfloat16)
    w_bf = w_t.astype(jnp.bfloat16)

    # Batch tiling: tile is a multiple of 8 sublanes, capped at MAX_TILE_B rows.
    tile_b = min(MAX_TILE_B, _round_up(batch, 8))
    padded_batch = _round_up(batch, tile_b)
    if padded_batch != batch:
        x_bf = jnp.pad(x_bf, ((0, padded_batch - batch), (0, 0)))
    grid_b = padded_batch // tile_b

    kernel = functools.partial(linear_leakyrelu_kernel,
                               negative_slope=negative_slope)
    out_padded = pl.pallas_call(
        kernel,
        out_shape=jax.ShapeDtypeStruct((padded_batch, OUT_PADDED), jnp.float32),
        grid_spec=pltpu.PrefetchScalarGridSpec(
            num_scalar_prefetch=0,
            grid=(grid_b,),
            in_specs=[
                pl.BlockSpec((tile_b, in_f), lambda i: (i, 0)),       # x tile
                pl.BlockSpec((in_f, OUT_PADDED), lambda i: (0, 0)),   # resident W^T
                pl.BlockSpec((1, OUT_PADDED), lambda i: (0, 0)),      # resident bias
            ],
            out_specs=pl.BlockSpec((tile_b, OUT_PADDED), lambda i: (i, 0)),
        ),
        compiler_params=pltpu.CompilerParams(
            # No reduction grid axis (the K loop lives inside one jnp.dot):
            # batch axis is truly parallel -> shardable across v7x's 2 TCs.
            dimension_semantics=("parallel",),
            # Budget against v7x's smaller VMEM (64 MiB physical / 32 MiB scoped
            # default); these tiles are tiny, so plenty of headroom everywhere.
            vmem_limit_bytes=32 * 1024 * 1024,
        ),
    )(x_bf, w_bf, b2d)

    # Strip batch padding and the zero-padded output lanes.
    return out_padded[:batch, :out_f]


def _reference(x, weight, bias, negative_slope):
    """Pure-JAX reference using the same bf16-input / f32-accumulate math."""
    t1 = jnp.dot(x.astype(jnp.bfloat16), weight.T.astype(jnp.bfloat16),
                 preferred_element_type=jnp.float32) + bias[None, :]
    return jnp.where(t1 > 0, t1, t1 * negative_slope)


if __name__ == "__main__":
    key = jax.random.PRNGKey(0)
    kx, kw, kb, kx2 = jax.random.split(key, 4)

    # Deterministic "parameters" for nn.Linear(128, 64): weight (64,128), bias (64,)
    weight = jax.random.normal(kw, (OUT_FEATURES, IN_FEATURES), jnp.float32) * 0.05
    bias = jax.random.normal(kb, (OUT_FEATURES,), jnp.float32) * 0.05

    # Spec input x1: (1, 128)
    x1 = jax.random.normal(kx, (1, IN_FEATURES), jnp.float32)

    out = linear_leakyrelu(x1, weight, bias, NEGATIVE_SLOPE)
    out = jax.block_until_ready(out)
    assert out.shape == (1, OUT_FEATURES)

    ref = _reference(x1, weight, bias, NEGATIVE_SLOPE)
    assert jnp.allclose(out, ref, atol=1e-4, rtol=1e-4)
    # Loose sanity check against full-f32 math (bf16 input rounding only).
    ref_f32_t1 = x1 @ weight.T + bias[None, :]
    ref_f32 = jnp.where(ref_f32_t1 > 0, ref_f32_t1, ref_f32_t1 * NEGATIVE_SLOPE)
    assert jnp.allclose(out, ref_f32, atol=3e-2, rtol=3e-2)

    # Exercise the multi-tile grid path (grid=2, padded, parallel batch axis).
    xb = jax.random.normal(kx2, (1000, IN_FEATURES), jnp.float32)
    out_b = jax.block_until_ready(linear_leakyrelu(xb, weight, bias, NEGATIVE_SLOPE))
    ref_b = _reference(xb, weight, bias, NEGATIVE_SLOPE)
    assert out_b.shape == (1000, OUT_FEATURES)
    assert jnp.allclose(out_b, ref_b, atol=1e-4, rtol=1e-4)

    print("KERNEL_OK")
</pallas_src>

<mosaic_0001>
module attributes {stable_mosaic.version = 11 : i64} {
  func.func @linear_leakyrelu_kernel(%arg0: i32, %arg1: memref<8x128xbf16, #tpu.memory_space<vmem>>, %arg2: memref<128x128xbf16, #tpu.memory_space<vmem>>, %arg3: memref<1x128xf32, #tpu.memory_space<vmem>>, %arg4: memref<8x128xf32, #tpu.memory_space<vmem>>) attributes {dimension_semantics = [#tpu.dimension_semantics<parallel>], iteration_bounds = array<i64: 1>, scalar_prefetch = 0 : i64, scratch_operands = 0 : i64, tpu.core_type = #tpu.core_type<tc>, window_params = [{transform_indices = @transform_0, window_bounds = array<i64: 8, 128>}, {pipeline_mode = #tpu.pipeline_mode<synchronous>, transform_indices = @transform_1, window_bounds = array<i64: 128, 128>}, {pipeline_mode = #tpu.pipeline_mode<synchronous>, transform_indices = @transform_2, window_bounds = array<i64: 1, 128>}, {transform_indices = @transform_3, window_bounds = array<i64: 8, 128>}]} {
    %c0 = arith.constant 0 : index
    %c0_0 = arith.constant 0 : index
    %0 = vector.load %arg1[%c0, %c0_0] : memref<8x128xbf16, #tpu.memory_space<vmem>>, vector<8x128xbf16>
    %c0_1 = arith.constant 0 : index
    %c0_2 = arith.constant 0 : index
    %1 = vector.load %arg2[%c0_1, %c0_2] : memref<128x128xbf16, #tpu.memory_space<vmem>>, vector<128x128xbf16>
    %cst = arith.constant dense<0.000000e+00> : vector<8x128xf32>
    %2 = tpu.matmul %0, %1, %cst {dimension_numbers = #tpu.dot_dimension_numbers<[1], [0], [0], [1], [0, 0, 1, 1], [], []>} : vector<8x128xbf16>, vector<128x128xbf16>, vector<8x128xf32> -> vector<8x128xf32>
    %c0_3 = arith.constant 0 : index
    %c0_4 = arith.constant 0 : index
    %3 = vector.load %arg3[%c0_3, %c0_4] : memref<1x128xf32, #tpu.memory_space<vmem>>, vector<1x128xf32>
    %4 = vector.broadcast %3 : vector<1x128xf32> to vector<8x128xf32>
    %5 = arith.addf %2, %4 : vector<8x128xf32>
    %cst_5 = arith.constant 0.000000e+00 : f32
    %6 = vector.broadcast %cst_5 : f32 to vector<8x128xf32>
    %7 = arith.cmpf ogt, %5, %6 : vector<8x128xf32>
    %cst_6 = arith.constant 0.00999999977 : f32
    %8 = vector.broadcast %cst_6 : f32 to vector<8x128xf32>
    %9 = arith.mulf %5, %8 : vector<8x128xf32>
    %10 = arith.select %7, %5, %9 : vector<8x128xi1>, vector<8x128xf32>
    %c0_7 = arith.constant 0 : index
    %c0_8 = arith.constant 0 : index
    %11 = vector.load %arg4[%c0_7, %c0_8] : memref<8x128xf32, #tpu.memory_space<vmem>>, vector<8x128xf32>
    tpu.vector_store %arg4[%c0_7, %c0_8], %10 {strides = array<i32>} : memref<8x128xf32, #tpu.memory_space<vmem>>, vector<8x128xf32>,
    return
  }
  func.func @transform_0(%arg0: i32) -> (i32, i32) {
    %c0_i32 = arith.constant 0 : i32
    %c0_i32_0 = arith.constant 0 : i32
    return %arg0, %c0_i32 : i32, i32
  }
  func.func @transform_1(%arg0: i32) -> (i32, i32) {
    %c0_i32 = arith.constant 0 : i32
    %c0_i32_0 = arith.constant 0 : i32
    %c0_i32_1 = arith.constant 0 : i32
    return %c0_i32, %c0_i32_0 : i32, i32
  }
  func.func @transform_2(%arg0: i32) -> (i32, i32) {
    %c0_i32 = arith.constant 0 : i32
    %c0_i32_0 = arith.constant 0 : i32
    %c0_i32_1 = arith.constant 0 : i32
    return %c0_i32, %c0_i32_0 : i32, i32
  }
  func.func @transform_3(%arg0: i32) -> (i32, i32) {
    %c0_i32 = arith.constant 0 : i32
    %c0_i32_0 = arith.constant 0 : i32
    return %arg0, %c0_i32 : i32, i32
  }
}

</mosaic_0001>

<bundles_post_ra>
// kernel: tpu_custom_call.1
= control target key start
LH: loop header
LB: loop body
LE: loop exit
PB: predicated region body
PF: predicated region fallthrough
CT: control target
= control target key end

     0   :  { %8 = vsyncpa [#allocation3], 0  ;;  %s310_s0 = inlined_call_operand.hbm [shape: bf16[8,128], index: 0, kind: input, shape index: {}]   ;;  %s311_s1 = inlined_call_operand.hbm [shape: bf16[128,128], index: 1, kind: input, shape index: {}]   ;;  %s312_s2 = inlined_call_operand.vmem [shape: f32[1,128], index: 2, kind: input, shape index: {}]   ;;  %s313_s3 = inlined_call_operand.hbm [shape: f32[8,128], index: 3, kind: output, shape index: {}]  }
   0x1   :  { %9 = vsyncpa [#allocation6], 0 }
   0x2   :  { %10 = vsyncpa [#allocation4], 0  ;;  %s16_s14 = sshll.u32 %s310_s0, 4  ;;  %s273_s15 = smov [#allocation2]   ;;  %s17_s14 = int_to_ptr.hbm [resolvable:$true] %s16_s14 }
   0x3   :  { %s18_s16 = sshll.u32 %s273_s15, 4  ;;  %s26_s19 = sshll.u32 %s311_s1, 4  ;;  %s19_s16 = int_to_ptr.vmem [resolvable:$true] %s18_s16  ;;  %s27_s19 = int_to_ptr.hbm [resolvable:$true] %s26_s19 }
   0x4   :  { %21 = dma.hbm_to_vmem [thread:$0]  %s17_s14, 64, %s19_s16, [#allocation3]  }
   0x5   :  { %s274_s20 = smov [#allocation5]   ;;  %s275_s22 = smov 64  }
   0x6   :  { %s28_s21 = sshll.u32 %s274_s20, 4  ;;  %s276_s23 = smov 4   ;;  %s29_s21 = int_to_ptr.vmem [resolvable:$true] %s28_s21 }
   0x7   :  { %34 = dma.hbm_to_vmem [thread:$0]  %s27_s19, 1024, %s29_s21, [#allocation6], %s275_s22, %s275_s22, %s276_s23  }
   0x8   :  { %267 = dma.done.wait [#allocation3], 64  }
   0x9   :  { %268 = vsyncadd [#allocation3], 4294967232 }
   0xa   :  { %269 = dma.done.wait [#allocation6], 1024  }
   0xb   :  { %270 = vsyncadd [#allocation6], 4294966272  ;;  %v188_v0 = vld [vmem:[#allocation5 + $0x38] sm:$0xff]  ;;  %v187_v1 = vld [vmem:[#allocation5 + $0x30] sm:$0xff]  ;;  %s277_s24 = smov [#allocation7]   ;;  %s138_s28 = sshll.u32 %s313_s3, 4  ;;  %s139_s28 = int_to_ptr.hbm [resolvable:$true] %s138_s28 }
   0xc   :  { %114 = vmatpush.bf16.msra.mxu0 %v188_v0  ;;  %v186_v2 = vld [vmem:[#allocation5 + $0x28] sm:$0xff]  ;;  %v185_v3 = vld [vmem:[#allocation5 + $0x20] sm:$0xff]  ;;  %v184_v4 = vld [vmem:[#allocation5 + $0x18] sm:$0xff]  ;;  %s136_s25 = sshll.u32 %s277_s24, 4  ;;  %s137_s25 = int_to_ptr.vmem [resolvable:$true] %s136_s25 }
   0xd   :  { %v183_v5 = vld [vmem:[#allocation5 + $0x10] sm:$0xff]  ;;  %v182_v6 = vld [vmem:[#allocation5 + $0x8] sm:$0xff]  ;;  %v181_v7 = vld [vmem:[#allocation5] sm:$0xff] }
   0xe   :  { %v45_v8 = vld [vmem:[#allocation2] sm:$0xf] }
   0xf   :  { %v194_v9 = vld [vmem:[%s312_s2] ss:$0 sm:$0xff] }
  0x10   :  { %115 = vmatpush.bf16.msra.mxu0 %v187_v1 }
  0x14   :  { %116 = vmatpush.bf16.msra.mxu0 %v186_v2 }
  0x18   :  { %117 = vmatpush.bf16.msra.mxu0 %v185_v3 }
  0x1c   :  { %118 = vmatpush.bf16.msra.mxu0 %v184_v4 }
  0x20   :  { %119 = vmatpush.bf16.msra.mxu0 %v183_v5 }
  0x24   :  { %120 = vmatpush.bf16.msra.mxu0 %v182_v6 }
  0x28   :  { %121 = vmatpush.bf16.msra.mxu0 %v181_v7 }
  0x2b   :  { %122 = vmatmul.bf16.vlgmr.msra.gmra.mxu0 %v45_v8 }
  0xa8   :  { %v123_v10 = vpop.f32.mrf.mxu0 }
  0xa9   :  { %v124_v11 = vadd.f32 %v194_v9, %v123_v10 }
  0xab   :  { %vm127_vm0 = vcmp.gt.f32.partialorder %v124_v11, 0.0  ;;  %v128_v12 = vmul.f32 0.01, %v124_v11 }
  0xad   :  { %v129_v13 = vsel %vm127_vm0, %v124_v11, %v128_v12 }
  0xae   :  { %130 = vst [vmem:[#allocation7] sm:$0xff] %v129_v13 }
  0xaf   :  { %141 = dma.vmem_to_hbm [thread:$0]  %s137_s25, 128, %s139_s28, [#allocation4]  }
  0xb0   :  { %v125_v14 = vpop.f32.mrf.mxu0 }
  0xb1   :  { %271 = dma.done.wait [#allocation4], 128  }
  0xb2   :  { %272 = vsyncadd [#allocation4], 4294967168 }
  0xb3   :  { %146 = vsyncpa [#allocation3], 1 }
  0xb4   :  { %147 = vsyncpa [#allocation6], 1 }
  0xb5   :  { %148 = vsyncpa [#allocation4], 1 }

</bundles_post_ra>
